<compile_context>
chip_gen: v7x
topology: tpu7x:2x2x1
jax: 0.10.0
libtpu: 0.0.40
codegen_flags: <defaults>
</compile_context>

<pallas_src>
import functools

import jax
import jax.numpy as jnp
from jax.experimental import pallas as pl
from jax.experimental.pallas import tpu as pltpu


_MIB = 1024 * 1024


# ----------------------------------------------------------------------------
# VMEM / tile-size derivation
# ----------------------------------------------------------------------------

def _vmem_caps():
    """(physical_vmem_bytes, scoped_limit_bytes) — generation aware."""
    try:
        cap = int(pltpu.get_tpu_info().vmem_capacity_bytes)
    except Exception:  # conservative fallback (assume v7x: 64 MiB / TC)
        cap = 64 * _MIB
    # 48 MiB on 64 MiB parts (v7x), 96 MiB on 128 MiB parts (v5e/v6e).
    return cap, min(96 * _MIB, (cap * 3) // 4)


def _block_budget_bytes(vmem_limit):
    # 2 arrays (in + out) x 2 pipeline buffers => 4 * block resident; keep that
    # well under the scoped limit and target a few MiB per block (the
    # HBM-streaming sweet spot: per-grid-step overhead ~0.35 us).
    return max(_MIB, min(8 * _MIB, vmem_limit // 6))


def _round_up(x, m):
    return ((x + m - 1) // m) * m


def _choose_row_tile(M, C, itemsize, budget):
    """Row-block height for the (M, C) path (reduce over lanes)."""
    row_bytes = max(C * itemsize, 1)
    bm_budget = max(8, ((budget // row_bytes) // 8) * 8)
    if M <= 8 or bm_budget >= M:
        # Whole array fits one block; split in two (if cheap) so both
        # TensorCores get work under dimension_semantics="parallel".
        if M >= 16:
            bm = _round_up((M + 1) // 2, 8)
            if bm < M:
                return bm
        return M  # full extent (always a legal block shape)
    return bm_budget


def _choose_batch_tile(N, per_batch_bytes, budget):
    """Batch-block size for full-(C,S) contiguous blocks."""
    bn = max(1, budget // max(per_batch_bytes, 1))
    bn = min(bn, N)
    if bn >= N and N >= 2:
        bn = (N + 1) // 2  # >= 2 grid steps -> both TensorCores busy
    return bn


def _choose_s_tile(S, C, itemsize, budget):
    """Lane-dense spatial tile (multiple of 128) when full-S doesn't fit."""
    col_bytes = max(C * itemsize, 1)
    bs = max(128, ((budget // col_bytes) // 128) * 128)
    if bs >= S:
        return S
    return bs


# ----------------------------------------------------------------------------
# Pallas kernels (native-dtype in/out, f32 reduction math)
# ----------------------------------------------------------------------------

def _l2n_rows_kernel(x_ref, o_ref, *, eps):
    """x_ref: (bm, C). L2-normalize each row along the lane (last) axis."""
    x = x_ref[...].astype(jnp.float32)
    norm = jnp.sqrt(jnp.sum(x * x, axis=-1, keepdims=True))   # (bm, 1)
    o_ref[...] = (x / (norm + eps)).astype(o_ref.dtype)


def _l2n_chan_kernel(x_ref, o_ref, *, eps):
    """x_ref: (bn, C, bs). L2-normalize along the channel (axis=1) axis."""
    x = x_ref[...].astype(jnp.float32)
    norm = jnp.sqrt(jnp.sum(x * x, axis=1, keepdims=True))    # (bn, 1, bs)
    o_ref[...] = (x / (norm + eps)).astype(o_ref.dtype)


# ----------------------------------------------------------------------------
# Wrapper
# ----------------------------------------------------------------------------

def l2n(x, eps=1e-6):
    """L2 normalization along dim=1, matching PyTorch L2N semantics."""
    if x.ndim < 2:
        raise ValueError("L2N expects an input with at least 2 dims")
    if not jnp.issubdtype(x.dtype, jnp.floating):
        x = x.astype(jnp.float32)

    eps = float(eps)
    itemsize = jnp.dtype(x.dtype).itemsize
    cap, vmem = _vmem_caps()
    budget = _block_budget_bytes(vmem)

    n_elems = 1
    for d in x.shape:
        n_elems *= int(d)
    n_bytes = n_elems * itemsize
    cost = pl.CostEstimate(
        flops=3 * n_elems,
        transcendentals=max(1, n_elems // int(x.shape[1])),
        bytes_accessed=2 * n_bytes,
    )

    if x.ndim == 2:
        # (M, C): dim=1 is the last (lane) dim -> reduce over lanes, tile rows.
        M, C = int(x.shape[0]), int(x.shape[1])
        bm = _choose_row_tile(M, C, itemsize, budget)
        grid = (pl.cdiv(M, bm),)
        block_bytes = bm * C * itemsize
        vmem_eff = max(vmem, min(cap - 8 * _MIB, 4 * block_bytes + 4 * _MIB))
        kernel = functools.partial(_l2n_rows_kernel, eps=eps)
        return pl.pallas_call(
            kernel,
            out_shape=jax.ShapeDtypeStruct((M, C), x.dtype),
            grid=grid,
            in_specs=[pl.BlockSpec((bm, C), lambda i: (i, 0))],
            out_specs=pl.BlockSpec((bm, C), lambda i: (i, 0)),
            compiler_params=pltpu.CompilerParams(
                dimension_semantics=("parallel",),
                vmem_limit_bytes=vmem_eff),
            cost_estimate=cost,
        )(x)

    # (N, C, *spatial): normalize along dim=1.  Flatten spatial dims so that
    # channels sit on sublanes and the lane-dense spatial axis is last.
    orig_shape = x.shape
    N, C = int(x.shape[0]), int(x.shape[1])
    S = 1
    for d in x.shape[2:]:
        S *= int(d)
    xr = x.reshape(N, C, S)
    per_batch = C * S * itemsize
    kernel = functools.partial(_l2n_chan_kernel, eps=eps)

    if per_batch <= budget:
        # Contiguous full-(C, S) blocks; fold batch to amortize step overhead.
        bn = _choose_batch_tile(N, per_batch, budget)
        grid = (pl.cdiv(N, bn),)
        block_bytes = bn * per_batch
        in_specs = [pl.BlockSpec((bn, C, S), lambda n: (n, 0, 0))]
        out_specs = pl.BlockSpec((bn, C, S), lambda n: (n, 0, 0))
        dim_sem = ("parallel",)
    else:
        # Split the lane-dense spatial axis into 128-multiples.
        bs = _choose_s_tile(S, C, itemsize, budget)
        grid = (N, pl.cdiv(S, bs))
        block_bytes = C * bs * itemsize
        in_specs = [pl.BlockSpec((1, C, bs), lambda n, s: (n, 0, s))]
        out_specs = pl.BlockSpec((1, C, bs), lambda n, s: (n, 0, s))
        dim_sem = ("parallel", "parallel")

    vmem_eff = max(vmem, min(cap - 8 * _MIB, 4 * block_bytes + 4 * _MIB))
    out = pl.pallas_call(
        kernel,
        out_shape=jax.ShapeDtypeStruct((N, C, S), x.dtype),
        grid=grid,
        in_specs=in_specs,
        out_specs=out_specs,
        compiler_params=pltpu.CompilerParams(
            dimension_semantics=dim_sem,
            vmem_limit_bytes=vmem_eff),
        cost_estimate=cost,
    )(xr)
    return out.reshape(orig_shape)


def _l2n_ref(x, eps=1e-6):
    """Pure-JAX reference mirroring the PyTorch forward (f32 math)."""
    xf = x.astype(jnp.float32)
    n = jnp.sqrt(jnp.sum(xf * xf, axis=1, keepdims=True))
    return (xf / (n + eps)).astype(x.dtype)


# ----------------------------------------------------------------------------

if __name__ == "__main__":
    key = jax.random.PRNGKey(0)
    k1, k2, k3 = jax.random.split(key, 3)

    # 4-D NCHW feature map (channels on dim=1), as used on conv features.
    x_nchw = jax.random.normal(k1, (2, 4, 16, 16), jnp.float32)
    # 2-D descriptor matrix (N, C), as used on pooled global descriptors.
    x_2d = jax.random.normal(k2, (2, 32), jnp.float32)
    # Odd spatial shape (exercises masked remainder blocks) and bf16 dtype
    # preservation / native-dtype streaming.
    x_odd = jax.random.normal(k3, (3, 4, 7, 7), jnp.float32)
    x_bf16 = x_nchw.astype(jnp.bfloat16)

    l2n_jit = jax.jit(functools.partial(l2n, eps=1e-6))

    y_nchw = jax.block_until_ready(l2n_jit(x_nchw))
    y_2d = jax.block_until_ready(l2n_jit(x_2d))
    y_odd = jax.block_until_ready(l2n_jit(x_odd))
    y_bf16 = jax.block_until_ready(l2n_jit(x_bf16))

    r_nchw = _l2n_ref(x_nchw)
    r_2d = _l2n_ref(x_2d)
    r_odd = _l2n_ref(x_odd)
    r_bf16 = _l2n_ref(x_bf16)

    assert y_nchw.shape == x_nchw.shape and y_nchw.dtype == jnp.float32
    assert y_2d.shape == x_2d.shape and y_2d.dtype == jnp.float32
    assert y_odd.shape == x_odd.shape and y_odd.dtype == jnp.float32
    assert y_bf16.shape == x_bf16.shape and y_bf16.dtype == jnp.bfloat16

    assert bool(jnp.all(jnp.isfinite(y_nchw)))
    assert bool(jnp.all(jnp.isfinite(y_2d)))
    assert bool(jnp.all(jnp.isfinite(y_odd)))

    assert bool(jnp.allclose(y_nchw, r_nchw, rtol=1e-5, atol=1e-6))
    assert bool(jnp.allclose(y_2d, r_2d, rtol=1e-5, atol=1e-6))
    assert bool(jnp.allclose(y_odd, r_odd, rtol=1e-5, atol=1e-6))
    assert bool(jnp.allclose(y_bf16.astype(jnp.float32),
                             r_bf16.astype(jnp.float32),
                             rtol=2e-2, atol=2e-2))

    print("KERNEL_OK")
</pallas_src>

<mosaic_0001>
module attributes {stable_mosaic.version = 11 : i64} {
  func.func @_l2n_chan_kernel(%arg0: i32, %arg1: memref<1x4x256xf32, #tpu.memory_space<vmem>>, %arg2: memref<1x4x256xf32, #tpu.memory_space<vmem>>) attributes {dimension_semantics = [#tpu.dimension_semantics<parallel>], iteration_bounds = array<i64: 2>, scalar_prefetch = 0 : i64, scratch_operands = 0 : i64, tpu.core_type = #tpu.core_type<tc>, window_params = [{transform_indices = @transform_0, window_bounds = array<i64: 1, 4, 256>}, {transform_indices = @transform_1, window_bounds = array<i64: 1, 4, 256>}]} {
    %c0 = arith.constant 0 : index
    %c0_0 = arith.constant 0 : index
    %c0_1 = arith.constant 0 : index
    %0 = vector.load %arg1[%c0, %c0_0, %c0_1] : memref<1x4x256xf32, #tpu.memory_space<vmem>>, vector<1x4x256xf32>
    %1 = arith.mulf %0, %0 : vector<1x4x256xf32>
    %cst = arith.constant dense<0.000000e+00> : vector<1x256xf32>
    %2 = vector.multi_reduction <add>, %1, %cst [1] : vector<1x4x256xf32> to vector<1x256xf32>
    %3 = vector.shape_cast %2 : vector<1x256xf32> to vector<1x1x256xf32>
    %4 = math.sqrt %3 : vector<1x1x256xf32>
    %cst_2 = arith.constant 9.99999997E-7 : f32
    %5 = vector.broadcast %cst_2 : f32 to vector<1x1x256xf32>
    %6 = arith.addf %4, %5 : vector<1x1x256xf32>
    %7 = vector.broadcast %6 : vector<1x1x256xf32> to vector<1x4x256xf32>
    %8 = arith.divf %0, %7 : vector<1x4x256xf32>
    %c0_3 = arith.constant 0 : index
    %c0_4 = arith.constant 0 : index
    %c0_5 = arith.constant 0 : index
    %9 = vector.load %arg2[%c0_3, %c0_4, %c0_5] : memref<1x4x256xf32, #tpu.memory_space<vmem>>, vector<1x4x256xf32>
    tpu.vector_store %arg2[%c0_3, %c0_4, %c0_5], %8 {strides = array<i32>} : memref<1x4x256xf32, #tpu.memory_space<vmem>>, vector<1x4x256xf32>,
    return
  }
  func.func @transform_0(%arg0: i32) -> (i32, i32, i32) {
    %c0_i32 = arith.constant 0 : i32
    %c0_i32_0 = arith.constant 0 : i32
    %c0_i32_1 = arith.constant 0 : i32
    return %arg0, %c0_i32, %c0_i32_0 : i32, i32, i32
  }
  func.func @transform_1(%arg0: i32) -> (i32, i32, i32) {
    %c0_i32 = arith.constant 0 : i32
    %c0_i32_0 = arith.constant 0 : i32
    %c0_i32_1 = arith.constant 0 : i32
    return %arg0, %c0_i32, %c0_i32_0 : i32, i32, i32
  }
}

</mosaic_0001>

<bundles_post_ra>
// kernel: l2n.1
= control target key start
LH: loop header
LB: loop body
LE: loop exit
PB: predicated region body
PF: predicated region fallthrough
CT: control target
= control target key end

     0   :  { %s260_s6 = smov 0   ;;  %s284_s0 = inlined_call_operand.vmem [shape: f32[2,4,256], index: 0, kind: input, shape index: {}]   ;;  %s285_s1 = inlined_call_operand.vmem [shape: f32[2,4,256], index: 1, kind: output, shape index: {}]  }
   0x1 LB: > { %s215_s7 = sadd.s32 4294967295, %s248_s6   ;;  %p219_p0 = scmp.ge.s32.totalorder %s248_s6, 1  ;;  %s248_s6 = sphi %s260_s6, %s11_s6  }
   0x2   : > { %p87_p1 = scmp.lt.s32.totalorder %s248_s6, 3 }
   0x4   : > { %p88_p2 = pnand %p219_p0, %p87_p1 }
   0x5   : > { %p107_p3 = scmp.lt.s32.totalorder (!%p88_p2), %s215_s7, 1  ;;  %vm122_vm0 = vcmask (!%p88_p2), 1043456  }
   0x6   : > { %91 = sbr.rel (%p88_p2) target bundleno = 67 (0x43), region = 24 }
   0xd   : > { %s287_s7 = smov (!%p107_p3, %s215_s7), 1 }
   0xe   : > { %s226_s8 = sshll.u32 %s287_s7, 3 }
   0xf   : > { %s111_s11 = scalar_lea.vmem %s284_s0, %s226_s8  ;;  %s116_s14 = scalar_lea.vmem %s285_s1, %s226_s8 }
  0x10   : > { %v117_v0 = vld [vmem:[%s111_s11] sm:$0xff] }
  0x11   : > { %v118_v1 = vmul.f32 %v117_v0, %v117_v0 }
  0x13   : > { %v120_v2 = vcombine.high %v118_v1, %v118_v1  ;;  %v123_v3 = vsel %vm122_vm0, %v118_v1, 0.0 }
  0x14   : > { %v124_v4 = vrot.slane %v123_v3, 4 }
  0x15   : > { %v130_v5 = vsel %vm122_vm0, %v120_v2, 0.0 }
  0x16   : > { %v125_v6 = vadd.f32 %v124_v4, %v123_v3  ;;  %v131_v7 = vrot.slane %v130_v5, 4 }
  0x18   : > { %v126_v8 = vrot.slane %v125_v6, 2  ;;  %v132_v9 = vadd.f32 %v131_v7, %v130_v5 }
  0x1a   : > { %v127_v10 = vadd.f32 %v126_v8, %v125_v6  ;;  %v133_v11 = vrot.slane %v132_v9, 2 }
  0x1c   : > { %v128_v12 = vrot.slane %v127_v10, 1  ;;  %v134_v13 = vadd.f32 %v133_v11, %v132_v9 }
  0x1e   : > { %v129_v14 = vadd.f32 %v128_v12, %v127_v10  ;;  %v135_v15 = vrot.slane %v134_v13, 1 }
  0x20   : > { %v136_v16 = vadd.f32 %v135_v15, %v134_v13  ;;  %236 = vrsqrt.f32 %v129_v14  ;;  %vm139_vm1 = vcmp.eq.f32.partialorder %v129_v14, inf  ;;  %v142_v18 = vand.u32 2147483648, %v129_v14 }
  0x21   : > { %vm141_vm2 = vcmp.eq.f32.partialorder %v129_v14, 0.0 }
  0x22   : > { %238 = vrsqrt.f32 %v136_v16  ;;  %vm146_vm3 = vcmp.eq.f32.partialorder %v136_v16, inf  ;;  %v149_v21 = vand.u32 2147483648, %v136_v16  ;;  %vm148_vm4 = vcmp.eq.f32.partialorder %v136_v16, 0.0 }
  0x2a   : > { %v237_v17 = vpop.eup %236 }
  0x2b   : > { %v138_v19 = vmul.f32 %v237_v17, %v129_v14 }
  0x2c   : > { %v239_v20 = vpop.eup %238 }
  0x2d   : > { %v140_v22 = vsel %vm139_vm1, %v129_v14, %v138_v19  ;;  %v145_v23 = vmul.f32 %v239_v20, %v136_v16 }
  0x2e   : > { %v143_v24 = vsel %vm141_vm2, %v142_v18, %v140_v22 }
  0x2f   : > { %v147_v25 = vsel %vm146_vm3, %v136_v16, %v145_v23  ;;  %v151_v26 = vadd.f32 1e-06, %v143_v24 }
  0x30   : > { %v150_v27 = vsel %vm148_vm4, %v149_v21, %v147_v25 }
  0x31   : > { %v152_v28 = vadd.f32 1e-06, %v150_v27 }
  0x33   : > { %v155_v29 = vcombine.low %v151_v26, %v152_v28 }
  0x35   : > { %240 = vrcp.f32 %v155_v29 }
  0x3f   : > { %v241_v30 = vpop.eup %240 }
  0x40   : > { %v158_v31 = vmul.f32 %v241_v30, %v117_v0 }
  0x42   : > { %159 = vst [vmem:[%s116_s14] sm:$0xff] %v158_v31 }
  0x43 PF: > { %s11_s6 = sadd.s32 1, %s248_s6  }
  0x44   : > { %p8_p4 = scmp.ge.s32.totalorder %s11_s6, 4  }
  0x46   :  { %10 = sbr.rel (!%p8_p4) target bundleno = 1 (0x1), region = 54 }

</bundles_post_ra>
